<compile_context>
chip_gen: v7x
topology: tpu7x:2x2x1
jax: 0.10.0
libtpu: 0.0.40
codegen_flags: <defaults>
</compile_context>

<pallas_src>
from datetime import datetime

import jax
import jax.numpy as jnp
from jax.experimental import pallas as pl
from jax.experimental.pallas import tpu as pltpu


def _pick_time_tile(T, Q, C, itemsize, override=None):
    """Pick a time-tile size tT so the logits tile (tT*Q, C) stays ~<=2 MiB.

    2 MiB per tile (double-buffered => ~4-5 MiB total VMEM) fits comfortably in
    the default scoped-VMEM budget on v5e (16 MiB), v6e (32 MiB) and v7x
    (32 MiB scoped / 64 MiB physical).
    """
    align = 8 if itemsize >= 4 else (16 if itemsize == 2 else 32)
    if override is not None:
        return max(align, (override // align) * align)
    budget = 2 * 1024 * 1024
    rows = max(1, budget // (C * itemsize))
    tT = max(1, rows // Q)
    tT = max(align, (tT // align) * align)
    # no point exceeding (aligned) T
    tT = min(tT, ((T + align - 1) // align) * align)
    return tT


def encodecmae_classification_loss(predicted_tokens, targets, non_visible_mask,
                                   visible_mask, quantizer_weights,
                                   quantizer_loss_weights=None,
                                   masked_weight=0.9,
                                   time_tile=None):
    # --- shape-truncation logic from the PyTorch forward (static shapes) ---
    B, T, Q, C = predicted_tokens.shape
    T_t = targets.shape[-1]
    if T < T_t:
        targets = targets[:, :, :T]
    elif T > T_t:
        predicted_tokens = predicted_tokens[:, :T_t]
        non_visible_mask = non_visible_mask[:, :T_t]
        visible_mask = visible_mask[:, :T_t]
        T = T_t

    # --- glue: keep logits in their native dtype (bf16 stays bf16 in HBM) ---
    logits = predicted_tokens                       # (B, T, Q, C), native dtype
    itemsize = jnp.dtype(logits.dtype).itemsize
    tT = _pick_time_tile(T, Q, C, itemsize, override=time_tile)
    nT = (T + tT - 1) // tT
    Tp = nT * tT                                    # padded time extent (small arrays only)
    R = tT * Q                                      # rows per tile of the flattened (T*Q, C) view
    total_rows = T * Q
    needs_row_mask = (Tp != T)                      # last logits tile reads past the array

    logits_flat = logits.reshape(B, T * Q, C)       # contiguous, free

    # targets: (Q, B, T) -> (B, T, Q) -> padded -> (B, Tp*Q, 1)
    tgt_btq = jnp.transpose(targets, (1, 2, 0)).astype(jnp.int32)
    if needs_row_mask:
        tgt_btq = jnp.pad(tgt_btq, ((0, 0), (0, Tp - T), (0, 0)))
    tgt_flat = tgt_btq.reshape(B, Tp * Q, 1)

    nvm = non_visible_mask.astype(jnp.float32)      # (B, T)
    vm = visible_mask.astype(jnp.float32)           # (B, T)
    nvm_p = jnp.pad(nvm, ((0, 0), (0, Tp - T))) if needs_row_mask else nvm
    vm_p = jnp.pad(vm, ((0, 0), (0, Tp - T))) if needs_row_mask else vm

    # Fold quantizer_weights * quantizer_loss_weights * mask into per-row
    # one-hot weight streams: w[b, t*Q+q, q'] = mask[b,t] * qlw[b,q] * qw[q] * (q==q')
    qw = quantizer_weights.astype(jnp.float32).reshape(Q)
    if quantizer_loss_weights is None:
        qlw = jnp.ones((B, Q), jnp.float32)         # torch default [[1.0]] broadcast
    else:
        qlw = jnp.broadcast_to(jnp.asarray(quantizer_loss_weights, jnp.float32), (B, Q))
    w_q = qlw * qw[None, :]                          # (B, Q)
    eye = jnp.eye(Q, dtype=jnp.float32)              # (Q, Q)
    w_onehot = w_q[:, None, :, None] * eye[None, None, :, :]          # (B, 1, Q, Q)
    wm = (nvm_p[:, :, None, None] * w_onehot).reshape(B, Tp * Q, Q)   # masked weights
    wu = (vm_p[:, :, None, None] * w_onehot).reshape(B, Tp * Q, Q)    # unmasked weights

    def kernel(logits_ref, tgt_ref, wm_ref, wu_ref, masked_out, unmasked_out):
        """Block shapes inside the kernel:
             logits_ref: (R, C) native dtype      tgt_ref: (R, 1) int32
             wm_ref/wu_ref: (R, Q) f32
             masked_out/unmasked_out: (1, 1, Q) f32  (resident across the time axis)
        """
        t = pl.program_id(1)

        @pl.when(t == 0)
        def _():
            masked_out[...] = jnp.zeros_like(masked_out)
            unmasked_out[...] = jnp.zeros_like(unmasked_out)

        lg = logits_ref[...].astype(jnp.float32)                 # (R, C)
        tgt = tgt_ref[...]                                       # (R, 1)

        # Numerically-stable cross entropy: CE = logsumexp(logits) - logits[target]
        # TODO(synk): if EUP-bound on v6e/v7x, exp could run in bf16 (keep f32 on v5e).
        m = jnp.max(lg, axis=-1, keepdims=True)                  # (R, 1)
        lse = jnp.log(jnp.sum(jnp.exp(lg - m), axis=-1, keepdims=True)) + m
        col = jax.lax.broadcasted_iota(jnp.int32, lg.shape, 1)   # class index on lanes
        tgt_logit = jnp.sum(jnp.where(col == tgt, lg, 0.0), axis=-1, keepdims=True)
        ce = lse - tgt_logit                                     # (R, 1)

        if needs_row_mask:
            # Last tile of logits overruns T*Q rows; zero out the invalid rows
            # (their weights are already zero, this guards against NaN garbage).
            row = jax.lax.broadcasted_iota(jnp.int32, (R, 1), 0) + t * R
            ce = jnp.where(row < total_rows, ce, 0.0)

        m_part = jnp.sum(ce * wm_ref[...], axis=0, keepdims=True)   # (1, Q)
        u_part = jnp.sum(ce * wu_ref[...], axis=0, keepdims=True)   # (1, Q)
        masked_out[...] += m_part[None]
        unmasked_out[...] += u_part[None]

    out_shape = (jax.ShapeDtypeStruct((B, 1, Q), jnp.float32),
                 jax.ShapeDtypeStruct((B, 1, Q), jnp.float32))

    masked_p, unmasked_p = pl.pallas_call(
        kernel,
        out_shape=out_shape,
        grid_spec=pltpu.PrefetchScalarGridSpec(
            num_scalar_prefetch=0,
            grid=(B, nT),
            in_specs=[
                pl.BlockSpec((None, R, C), lambda b, t: (b, t, 0)),   # logits (flattened T*Q rows)
                pl.BlockSpec((None, R, 1), lambda b, t: (b, t, 0)),   # targets
                pl.BlockSpec((None, R, Q), lambda b, t: (b, t, 0)),   # masked weights
                pl.BlockSpec((None, R, Q), lambda b, t: (b, t, 0)),   # unmasked weights
            ],
            out_specs=[
                pl.BlockSpec((1, 1, Q), lambda b, t: (b, 0, 0)),
                pl.BlockSpec((1, 1, Q), lambda b, t: (b, 0, 0)),
            ],
        ),
        compiler_params=pltpu.CompilerParams(
            # batch axis shards across TensorCores (v7x megacore); time axis is
            # the accumulation axis so it must stay "arbitrary".
            dimension_semantics=("parallel", "arbitrary")),
    )(logits_flat, tgt_flat, wm, wu)

    # --- tiny scalar epilogue (matches torch max(1, sum(mask)) normalization) ---
    masked_q_sum = jnp.sum(masked_p, axis=(0, 1))       # (Q,)
    unmasked_q_sum = jnp.sum(unmasked_p, axis=(0, 1))   # (Q,)

    num_non_visible = jnp.maximum(1.0, jnp.sum(nvm))
    num_visible = jnp.maximum(1.0, jnp.sum(vm))

    masked_q = masked_q_sum / num_non_visible
    unmasked_q = unmasked_q_sum / num_visible
    masked_loss = jnp.sum(masked_q_sum) / num_non_visible
    unmasked_loss = jnp.sum(unmasked_q_sum) / num_visible
    total = masked_weight * masked_loss + (1.0 - masked_weight) * unmasked_loss

    all_losses = {}
    for q in range(Q):
        all_losses[f'masked_loss_q{q}'] = masked_q[q]
        all_losses[f'unmasked_loss_q{q}'] = unmasked_q[q]
    all_losses['masked_loss'] = masked_loss
    all_losses['unmasked_loss'] = unmasked_loss
    all_losses['loss'] = total
    # TODO(synk): 'time' key is host wall-clock metadata (datetime), not kernel compute.
    all_losses['time'] = int(datetime.now().strftime('%y%m%d%H%M%S'))
    return all_losses


def _reference(logits, targets, nvm, vm, qw, masked_weight=0.9):
    """Pure-JAX reference of the torch forward (default quantizer_loss_weights)."""
    tgt = jnp.transpose(targets, (1, 2, 0))                      # (B, T, Q)
    logp = jax.nn.log_softmax(logits.astype(jnp.float32), axis=-1)
    ce = -jnp.take_along_axis(logp, tgt[..., None], axis=-1)[..., 0]   # (B, T, Q)
    loss = ce * qw[None, None, :]
    masked = loss * nvm[:, :, None].astype(jnp.float32)
    unmasked = loss * vm[:, :, None].astype(jnp.float32)
    n_nv = jnp.maximum(1.0, jnp.sum(nvm.astype(jnp.float32)))
    n_v = jnp.maximum(1.0, jnp.sum(vm.astype(jnp.float32)))
    masked_loss = jnp.sum(masked) / n_nv
    unmasked_loss = jnp.sum(unmasked) / n_v
    return masked_weight * masked_loss + (1.0 - masked_weight) * unmasked_loss


def _run_case(key, B, T, Q, C, dtype, time_tile, rtol, atol):
    k1, k2, k3 = jax.random.split(key, 3)
    predicted_tokens = jax.random.normal(k1, (B, T, Q, C), jnp.float32).astype(dtype)
    targets = jax.random.randint(k2, (Q, B, T), 0, C).astype(jnp.int32)
    non_visible_mask = (jax.random.uniform(k3, (B, T)) < 0.6).astype(jnp.float32)
    visible_mask = 1.0 - non_visible_mask
    quantizer_weights = jnp.linspace(1.0, 0.25, Q, dtype=jnp.float32)

    out = encodecmae_classification_loss(
        predicted_tokens, targets, non_visible_mask, visible_mask,
        quantizer_weights, quantizer_loss_weights=None, masked_weight=0.9,
        time_tile=time_tile)
    loss = jax.block_until_ready(out['loss'])

    ref = jax.block_until_ready(_reference(
        predicted_tokens, targets, non_visible_mask, visible_mask,
        quantizer_weights))
    assert jnp.allclose(loss, ref, rtol=rtol, atol=atol), (dtype, time_tile, loss, ref)


if __name__ == "__main__":
    key = jax.random.PRNGKey(0)
    k_a, k_b, k_c = jax.random.split(key, 3)

    # small f32 case (single time tile)
    _run_case(k_a, B=2, T=8, Q=4, C=128, dtype=jnp.float32,
              time_tile=None, rtol=1e-5, atol=1e-5)
    # f32 case exercising time-tiling + tail padding (T not divisible by tile)
    _run_case(k_b, B=2, T=20, Q=4, C=128, dtype=jnp.float32,
              time_tile=8, rtol=1e-5, atol=1e-5)
    # bf16 logits fed in their native dtype (HBM traffic halved; math in f32 in-kernel)
    _run_case(k_c, B=2, T=8, Q=4, C=128, dtype=jnp.bfloat16,
              time_tile=None, rtol=1e-4, atol=1e-4)

    print("KERNEL_OK")
</pallas_src>

<mosaic_0001>
module attributes {stable_mosaic.version = 11 : i64} {
  func.func @kernel(%arg0: i32, %arg1: i32, %arg2: memref<1x32x128xf32, #tpu.memory_space<vmem>>, %arg3: memref<1x32x1xi32, #tpu.memory_space<vmem>>, %arg4: memref<1x32x4xf32, #tpu.memory_space<vmem>>, %arg5: memref<1x32x4xf32, #tpu.memory_space<vmem>>, %arg6: memref<1x1x4xf32, #tpu.memory_space<vmem>>, %arg7: memref<1x1x4xf32, #tpu.memory_space<vmem>>) attributes {dimension_semantics = [#tpu.dimension_semantics<parallel>, #tpu.dimension_semantics<arbitrary>], iteration_bounds = array<i64: 2, 1>, scalar_prefetch = 0 : i64, scratch_operands = 0 : i64, tpu.core_type = #tpu.core_type<tc>, window_params = [{transform_indices = @transform_0, window_bounds = array<i64: 1, 32, 128>}, {transform_indices = @transform_1, window_bounds = array<i64: 1, 32, 1>}, {transform_indices = @transform_2, window_bounds = array<i64: 1, 32, 4>}, {transform_indices = @transform_3, window_bounds = array<i64: 1, 32, 4>}, {transform_indices = @transform_4, window_bounds = array<i64: 1, 1, 4>}, {transform_indices = @transform_5, window_bounds = array<i64: 1, 1, 4>}]} {
    %c0_i32 = arith.constant 0 : i32
    %0 = arith.cmpi eq, %arg1, %c0_i32 : i32
    %1 = arith.extui %0 : i1 to i32
    %c0_i32_0 = arith.constant 0 : i32
    %2 = arith.cmpi ne, %1, %c0_i32_0 : i32
    scf.if %2 {
      %cst_29 = arith.constant 0.000000e+00 : f32
      %44 = vector.broadcast %cst_29 : f32 to vector<1x1x4xf32>
      %c0_30 = arith.constant 0 : index
      %c0_31 = arith.constant 0 : index
      %c0_32 = arith.constant 0 : index
      %45 = vector.load %arg6[%c0_30, %c0_31, %c0_32] : memref<1x1x4xf32, #tpu.memory_space<vmem>>, vector<1x1x4xf32>
      tpu.vector_store %arg6[%c0_30, %c0_31, %c0_32], %44 {strides = array<i32>} : memref<1x1x4xf32, #tpu.memory_space<vmem>>, vector<1x1x4xf32>,
      %cst_33 = arith.constant 0.000000e+00 : f32
      %46 = vector.broadcast %cst_33 : f32 to vector<1x1x4xf32>
      %c0_34 = arith.constant 0 : index
      %c0_35 = arith.constant 0 : index
      %c0_36 = arith.constant 0 : index
      %47 = vector.load %arg7[%c0_34, %c0_35, %c0_36] : memref<1x1x4xf32, #tpu.memory_space<vmem>>, vector<1x1x4xf32>
      tpu.vector_store %arg7[%c0_34, %c0_35, %c0_36], %46 {strides = array<i32>} : memref<1x1x4xf32, #tpu.memory_space<vmem>>, vector<1x1x4xf32>,
    } else {
    }
    %c0 = arith.constant 0 : index
    %c0_1 = arith.constant 0 : index
    %c0_2 = arith.constant 0 : index
    %3 = vector.load %arg2[%c0, %c0_1, %c0_2] : memref<1x32x128xf32, #tpu.memory_space<vmem>>, vector<1x32x128xf32>
    %4 = vector.shape_cast %3 : vector<1x32x128xf32> to vector<32x128xf32>
    %c0_3 = arith.constant 0 : index
    %c0_4 = arith.constant 0 : index
    %c0_5 = arith.constant 0 : index
    %5 = vector.load %arg3[%c0_3, %c0_4, %c0_5] : memref<1x32x1xi32, #tpu.memory_space<vmem>>, vector<1x32x1xi32>
    %6 = vector.shape_cast %5 : vector<1x32x1xi32> to vector<32x1xi32>
    %cst = arith.constant dense<0xFF800000> : vector<32xf32>
    %7 = vector.multi_reduction <maximumf>, %4, %cst [1] : vector<32x128xf32> to vector<32xf32>
    %8 = vector.shape_cast %7 : vector<32xf32> to vector<32x1xf32>
    %9 = vector.broadcast %8 : vector<32x1xf32> to vector<32x128xf32>
    %10 = arith.subf %4, %9 : vector<32x128xf32>
    %11 = math.exp %10 : vector<32x128xf32>
    %cst_6 = arith.constant dense<0.000000e+00> : vector<32xf32>
    %12 = vector.multi_reduction <add>, %11, %cst_6 [1] : vector<32x128xf32> to vector<32xf32>
    %13 = vector.shape_cast %12 : vector<32xf32> to vector<32x1xf32>
    %14 = math.log %13 : vector<32x1xf32>
    %15 = arith.addf %14, %8 : vector<32x1xf32>
    %16 = tpu.iota {dimensions = array<i32: 1>} : vector<32x128xi32>
    %17 = vector.broadcast %6 : vector<32x1xi32> to vector<32x128xi32>
    %18 = arith.cmpi eq, %16, %17 : vector<32x128xi32>
    %cst_7 = arith.constant 0.000000e+00 : f32
    %19 = vector.broadcast %cst_7 : f32 to vector<32x128xf32>
    %20 = arith.select %18, %4, %19 : vector<32x128xi1>, vector<32x128xf32>
    %cst_8 = arith.constant dense<0.000000e+00> : vector<32xf32>
    %21 = vector.multi_reduction <add>, %20, %cst_8 [1] : vector<32x128xf32> to vector<32xf32>
    %22 = vector.shape_cast %21 : vector<32xf32> to vector<32x1xf32>
    %23 = arith.subf %15, %22 : vector<32x1xf32>
    %c0_9 = arith.constant 0 : index
    %c0_10 = arith.constant 0 : index
    %c0_11 = arith.constant 0 : index
    %24 = vector.load %arg4[%c0_9, %c0_10, %c0_11] : memref<1x32x4xf32, #tpu.memory_space<vmem>>, vector<1x32x4xf32>
    %25 = vector.shape_cast %24 : vector<1x32x4xf32> to vector<32x4xf32>
    %26 = vector.broadcast %23 : vector<32x1xf32> to vector<32x4xf32>
    %27 = arith.mulf %26, %25 : vector<32x4xf32>
    %cst_12 = arith.constant dense<0.000000e+00> : vector<4xf32>
    %28 = vector.multi_reduction <add>, %27, %cst_12 [0] : vector<32x4xf32> to vector<4xf32>
    %29 = vector.shape_cast %28 : vector<4xf32> to vector<1x4xf32>
    %c0_13 = arith.constant 0 : index
    %c0_14 = arith.constant 0 : index
    %c0_15 = arith.constant 0 : index
    %30 = vector.load %arg5[%c0_13, %c0_14, %c0_15] : memref<1x32x4xf32, #tpu.memory_space<vmem>>, vector<1x32x4xf32>
    %31 = vector.shape_cast %30 : vector<1x32x4xf32> to vector<32x4xf32>
    %32 = vector.broadcast %23 : vector<32x1xf32> to vector<32x4xf32>
    %33 = arith.mulf %32, %31 : vector<32x4xf32>
    %cst_16 = arith.constant dense<0.000000e+00> : vector<4xf32>
    %34 = vector.multi_reduction <add>, %33, %cst_16 [0] : vector<32x4xf32> to vector<4xf32>
    %35 = vector.shape_cast %34 : vector<4xf32> to vector<1x4xf32>
    %c0_17 = arith.constant 0 : index
    %c0_18 = arith.constant 0 : index
    %c0_19 = arith.constant 0 : index
    %36 = vector.load %arg6[%c0_17, %c0_18, %c0_19] : memref<1x1x4xf32, #tpu.memory_space<vmem>>, vector<1x1x4xf32>
    %37 = vector.shape_cast %29 : vector<1x4xf32> to vector<1x1x4xf32>
    %38 = arith.addf %36, %37 : vector<1x1x4xf32>
    %c0_20 = arith.constant 0 : index
    %c0_21 = arith.constant 0 : index
    %c0_22 = arith.constant 0 : index
    %39 = vector.load %arg6[%c0_20, %c0_21, %c0_22] : memref<1x1x4xf32, #tpu.memory_space<vmem>>, vector<1x1x4xf32>
    tpu.vector_store %arg6[%c0_20, %c0_21, %c0_22], %38 {strides = array<i32>} : memref<1x1x4xf32, #tpu.memory_space<vmem>>, vector<1x1x4xf32>,
    %c0_23 = arith.constant 0 : index
    %c0_24 = arith.constant 0 : index
    %c0_25 = arith.constant 0 : index
    %40 = vector.load %arg7[%c0_23, %c0_24, %c0_25] : memref<1x1x4xf32, #tpu.memory_space<vmem>>, vector<1x1x4xf32>
    %41 = vector.shape_cast %35 : vector<1x4xf32> to vector<1x1x4xf32>
    %42 = arith.addf %40, %41 : vector<1x1x4xf32>
    %c0_26 = arith.constant 0 : index
    %c0_27 = arith.constant 0 : index
    %c0_28 = arith.constant 0 : index
    %43 = vector.load %arg7[%c0_26, %c0_27, %c0_28] : memref<1x1x4xf32, #tpu.memory_space<vmem>>, vector<1x1x4xf32>
    tpu.vector_store %arg7[%c0_26, %c0_27, %c0_28], %42 {strides = array<i32>} : memref<1x1x4xf32, #tpu.memory_space<vmem>>, vector<1x1x4xf32>,
    return
  }
  func.func @transform_0(%arg0: i32, %arg1: i32) -> (i32, i32, i32) {
    %c0_i32 = arith.constant 0 : i32
    %c0_i32_0 = arith.constant 0 : i32
    return %arg0, %arg1, %c0_i32 : i32, i32, i32
  }
  func.func @transform_1(%arg0: i32, %arg1: i32) -> (i32, i32, i32) {
    %c0_i32 = arith.constant 0 : i32
    %c0_i32_0 = arith.constant 0 : i32
    return %arg0, %arg1, %c0_i32 : i32, i32, i32
  }
  func.func @transform_2(%arg0: i32, %arg1: i32) -> (i32, i32, i32) {
    %c0_i32 = arith.constant 0 : i32
    %c0_i32_0 = arith.constant 0 : i32
    return %arg0, %arg1, %c0_i32 : i32, i32, i32
  }
  func.func @transform_3(%arg0: i32, %arg1: i32) -> (i32, i32, i32) {
    %c0_i32 = arith.constant 0 : i32
    %c0_i32_0 = arith.constant 0 : i32
    return %arg0, %arg1, %c0_i32 : i32, i32, i32
  }
  func.func @transform_4(%arg0: i32, %arg1: i32) -> (i32, i32, i32) {
    %c0_i32 = arith.constant 0 : i32
    %c0_i32_0 = arith.constant 0 : i32
    %c0_i32_1 = arith.constant 0 : i32
    return %arg0, %c0_i32, %c0_i32_0 : i32, i32, i32
  }
  func.func @transform_5(%arg0: i32, %arg1: i32) -> (i32, i32, i32) {
    %c0_i32 = arith.constant 0 : i32
    %c0_i32_0 = arith.constant 0 : i32
    %c0_i32_1 = arith.constant 0 : i32
    return %arg0, %c0_i32, %c0_i32_0 : i32, i32, i32
  }
}

</mosaic_0001>

<bundles_post_ra>
// kernel: tpu_custom_call.1
= control target key start
LH: loop header
LB: loop body
LE: loop exit
PB: predicated region body
PF: predicated region fallthrough
CT: control target
= control target key end

     0   :  { %11 = vsyncpa [#allocation3], 0  ;;  %s1132_s0 = inlined_call_operand.vmem [shape: f32[2,32,128], index: 0, kind: input, shape index: {}]   ;;  %s1133_s1 = inlined_call_operand.vmem [shape: s32[2,32,1], index: 1, kind: input, shape index: {}]   ;;  %s1134_s2 = inlined_call_operand.vmem [shape: f32[2,32,4], index: 2, kind: input, shape index: {}]   ;;  %s1135_s3 = inlined_call_operand.vmem [shape: f32[2,32,4], index: 3, kind: input, shape index: {}]   ;;  %s1136_s4 = inlined_call_operand.hbm [shape: f32[2,1,4], index: 4, kind: output, shape index: {0}]   ;;  %s1137_s5 = inlined_call_operand.hbm [shape: f32[2,1,4], index: 5, kind: output, shape index: {1}]  }
   0x1   :  { %13 = vsyncpa [#allocation3 + $0x1], 0 }
   0x2   :  { %14 = vsyncpa [#allocation5], 0 }
   0x3   :  { %16 = vsyncpa [#allocation5 + $0x1], 0  ;;  %s935_s18 = smov 0   ;;  %s937_s19 = smov 0  }
   0x4   :  { %s939_s20 = smov 0   ;;  %s941_s21 = smov 0  }
   0x5   :  { %s943_s22 = smov 0   ;;  %s945_s23 = smov 0  }
   0x6 LB: > { %s688_s24 = sadd.s32 4294967295, %s899_s23   ;;  %s689_s25 = sadd.s32 4294967294, %s899_s23   ;;  %s899_s23 = sphi %s945_s23, %s22_s23   ;;  %s895_s22 = sphi %s943_s22, %s1144_s22   ;;  %s891_s21 = sphi %s941_s21, %s1143_s21   ;;  %s887_s20 = sphi %s939_s20, %s1142_s20   ;;  %s883_s19 = sphi %s937_s19, %s1141_s19   ;;  %s879_s18 = sphi %s935_s18, %s1140_s18  }
   0x7   : > { %s34_s26 = sadd.s32 1, %s895_s22  ;;  %s153_s27 = sadd.s32 1, %s887_s20 }
   0x8   : > { %p36_p0 = scmp.ge.s32.totalorder %s34_s26, 2  ;;  %p163_p1 = scmp.ne.s32.totalorder %s887_s20, %s883_s19 }
   0x9   : > { %p164_p2 = scmp.eq.s32.totalorder %s688_s24, 1  ;;  %p169_p3 = scmp.ne.s32.totalorder %s883_s19, %s879_s18 }
   0xa   : > { %s1146_s26 = smov (%p36_p0, %s34_s26), 0  ;;  %p170_p5 = scmp.eq.s32.totalorder %s689_s25, 1 }
   0xb   : > { %p975_p4 = por %p164_p2, %p163_p1  ;;  %s150_s29 = ssub.s32 %s895_s22, %s1146_s26 }
   0xc   : > { %p692_p6 = scmp.ge.s32.totalorder %s899_s23, 1  ;;  %p151_p7 = scmp.eq.s32.totalorder %s150_s29, 0 }
   0xd   : > { %p982_p8 = por %p170_p5, %p169_p3  ;;  %p266_p9 = scmp.lt.s32.totalorder %s899_s23, 3 }
   0xe   : > { %s988_s6 = scalar_select %p151_p7, %s887_s20, %s153_s27  }
   0xf   : > { %p267_p10 = pnand %p692_p6, %p266_p9 }
  0x10   : > { %p329_p11 = scmp.lt.s32.totalorder (!%p267_p10), %s891_s21, 1  ;;  %v901_v0 = vmov (!%p267_p10), 0   ;;  %v423_v22 = vlaneseq (!%p267_p10)  ;;  %s1012_s15 = sand.u32 (!%p267_p10), 1, %s883_s19   ;;  %vm372_vm4 = vcmask (!%p267_p10), 24576   ;;  %v902_v35 = vmov (!%p267_p10), 0.0  }
  0x11   : > { %270 = sbr.rel (%p267_p10) target bundleno = 410 (0x19a), region = 36  ;;  %772 = vset.pattern.permute.xlu1 (!%p267_p10), %v901_v0  ;;  %771 = vset.pattern.permute.xlu0 (!%p267_p10), %v901_v0  ;;  %s1015_s16 = scalar_lea.vmem (!%p267_p10), [#allocation2], %s1012_s15  ;;  %vm465_vm5 = vcmask (!%p267_p10), 31744  }
  0x12   : > { %v424_v24 = vand.u32 (!%p267_p10), 127, %v423_v22  ;;  %373 = vst.msk [vmem:[%s1015_s16] sm:$0x1] (!%p267_p10), %vm372_vm4, %v902_v35  ;;  %s1020_s17 = scalar_lea.vmem (!%p267_p10), [#allocation4], %s1012_s15  ;;  %s524_s10 = sshll.u32 (!%p267_p10), %s1015_s16, 4  ;;  %s1053_s10 = int_to_ptr.vmem [resolvable:$true] %s524_s10 }
  0x13   : > { %374 = vst.msk [vmem:[%s1020_s17] sm:$0x1] (!%p267_p10), %vm372_vm4, %v902_v35  ;;  %s789_s29 = scalar_lea.vmem (!%p267_p10), %s1053_s10, 16 }
  0x14   : > { %p790_p12 = scmp.ne.s32.totalorder (!%p267_p10), %s1053_s10, %s789_s29 }
  0x16   : > { %p791_p13 = pnand (!%p267_p10), %p790_p12, %p975_p4 }
  0x18   : > { %s330_s7 = scalar_select %p329_p11, %s891_s21, 1 }
  0x19   : > { %p792_p0 = pneg %p791_p13 }
  0x1a   : > { %s992_s8 = sshll.u32 %s330_s7, 5  ;;  %s903_s7 = smov [#allocation2]  }
  0x1b   : > { %s336_s11 = scalar_lea.vmem %s1132_s0, %s992_s8  ;;  %s346_s14 = scalar_lea.vmem %s1133_s1, %s992_s8 }
  0x1c   : > { %v375_v1 = vld [vmem:[%s336_s11] sm:$0xff]  ;;  %v377_v2 = vld [vmem:[%s336_s11 + $0x10] sm:$0xff]  ;;  %v376_v3 = vld [vmem:[%s336_s11 + $0x8] sm:$0xff]  ;;  %s356_s27 = scalar_lea.vmem %s1134_s2, %s992_s8  ;;  %s366_s9 = scalar_lea.vmem %s1135_s3, %s992_s8 }
  0x1d   : > { %383 = vmax.xlane.f32.xlu0 %v375_v1  ;;  %387 = vmax.xlane.f32.xlu1 %v377_v2  ;;  %v378_v4 = vld [vmem:[%s336_s11 + $0x18] sm:$0xff]  ;;  %v380_v5 = vld [vmem:[%s346_s14 + $0x8] sm:$0xff]  ;;  %v381_v6 = vld [vmem:[%s346_s14 + $0x10] sm:$0xff]  ;;  %s701_s8 = sshll.u32 %s891_s21, 4  ;;  %s537_s11 = sshll.u32 %s1020_s17, 4  ;;  %s1060_s11 = int_to_ptr.vmem [resolvable:$true] %s537_s11 }
  0x1e   : > { %v379_v7 = vld [vmem:[%s346_s14] sm:$0xff]  ;;  %v382_v8 = vld [vmem:[%s346_s14 + $0x18] sm:$0xff]  ;;  %v459_v54 = vld [vmem:[%s356_s27 + $0x10] sm:$0xff]  ;;  %s1051_s14 = scalar_lea.hbm %s1136_s4, %s701_s8  ;;  %s1058_s25 = scalar_lea.hbm %s1137_s5, %s701_s8 }
  0x1f   : > { %v457_v50 = vld [vmem:[%s356_s27] sm:$0xff]  ;;  %v481_v58 = vld [vmem:[%s366_s9 + $0x10] sm:$0xff]  ;;  %v458_v60 = vld [vmem:[%s356_s27 + $0x8] sm:$0xff] }
  0x20   : > { %v479_v51 = vld [vmem:[%s366_s9] sm:$0xff]  ;;  %v480_v61 = vld [vmem:[%s366_s9 + $0x8] sm:$0xff] }
  0x21   : > { %385 = vmax.xlane.f32.xlu0 %v376_v3  ;;  %389 = vmax.xlane.f32.xlu1 %v378_v4 }
  0x32   : > { %429 = vperm.xlu1 %772, %v380_v5  }
  0x36   : > { %432 = vperm.xlu1 %772, %v381_v6   ;;  %v460_v6 = vld [vmem:[%s356_s27 + $0x18] sm:$0xff]  ;;  %s508_s27 = scalar_lea.sflag [#allocation3], %s1012_s15 }
  0x37   : > { %426 = vperm.xlu0 %771, %v379_v7   ;;  %v482_v7 = vld [vmem:[%s366_s9 + $0x18] sm:$0xff]  ;;  %s793_s9 = sshll.u32 %s903_s7, 4  ;;  %s794_s9 = int_to_ptr.vmem [resolvable:$false] %s793_s9 }
  0x38   : > { %s795_s12 = scalar_lea.vmem %s794_s9, 32  ;;  %p796_p1 = scmp.lt.s32.totalorder %s1053_s10, %s794_s9 }
  0x39   : > { %p797_p2 = scmp.lt.s32.totalorder %s795_s12, %s789_s29 }
  0x3a   : > { %435 = vperm.xlu1 %772, %v382_v8  }
  0x3b   : > { %p798_p3 = por %p797_p2, %p796_p1 }
  0x3d   : > { %p799_p5 = pnand %p798_p3, %p792_p0 }
  0xaa   : > { %v384_v9 = vpop.xlane.xlu0 %383  ;;  %v1002_v10 = vpop.xlane.xlu1 %387 }
  0xab   : > { %v391_v11 = vsub.f32 %v375_v1, %v384_v9  ;;  %v393_v12 = vsub.f32 %v377_v2, %v1002_v10 }
  0xad   : > { %v395_v13 = vmul.f32 1.442695, %v391_v11  ;;  %v399_v14 = vmul.f32 1.442695, %v393_v12 }
  0xae   : > { %v1005_v15 = vpop.xlane.xlu0 %385  ;;  %v1007_v16 = vpop.xlane.xlu1 %389 }
  0xaf   : > { %773 = vpow2.f32 %v395_v13  ;;  %v392_v17 = vsub.f32 %v376_v3, %v1005_v15  ;;  %v394_v18 = vsub.f32 %v378_v4, %v1007_v16 }
  0xb0   : > { %775 = vpow2.f32 %v399_v14 }
  0xb1   : > { %v397_v19 = vmul.f32 1.442695, %v392_v17  ;;  %v401_v20 = vmul.f32 1.442695, %v394_v18 }
  0xb2   : > { %v430_v21 = vpop.permute.xlu1 %429 }
  0xb3   : > { %777 = vpow2.f32 %v397_v19  ;;  %vm438_vm2 = vcmp.eq.s32.totalorder %v424_v24, %v430_v21 }
  0xb4   : > { %779 = vpow2.f32 %v401_v20  ;;  %v442_v33 = vsel %vm438_vm2, %v376_v3, 0.0 }
  0xb6   : > { %v433_v26 = vpop.permute.xlu1 %432  ;;  %v427_v28 = vpop.permute.xlu0 %426 }
  0xb7   : > { %vm439_vm0 = vcmp.eq.s32.totalorder %v424_v24, %v433_v26  ;;  %vm437_vm1 = vcmp.eq.s32.totalorder %v424_v24, %v427_v28 }
  0xb8   : > { %v443_v30 = vsel %vm439_vm0, %v377_v2, 0.0  ;;  %v441_v31 = vsel %vm437_vm1, %v375_v1, 0.0 }
  0xb9   : > { %v774_v23 = vpop.eup %773 }
  0xba   : > { %403 = vadd.xlane.f32.xlu1 %v774_v23  ;;  %v776_v25 = vpop.eup %775  ;;  %v436_v32 = vpop.permute.xlu1 %435 }
  0xbb   : > { %vm440_vm3 = vcmp.eq.s32.totalorder %v424_v24, %v436_v32 }
  0xbc   : > { %v444_v34 = vsel %vm440_vm3, %v378_v4, 0.0 }
  0xbd   : > { %v778_v27 = vpop.eup %777 }
  0xbe   : > { %407 = vadd.xlane.f32.xlu1 %v776_v25  ;;  %405 = vadd.xlane.f32.xlu0 %v778_v27  ;;  %v780_v29 = vpop.eup %779 }
  0xc2   : > { %409 = vadd.xlane.f32.xlu1 %v780_v29  ;;  %449 = vadd.xlane.f32.xlu0 %v443_v30 }
  0xc6   : > { %445 = vadd.xlane.f32.xlu1 %v441_v31 }
  0xca   : > { %447 = vadd.xlane.f32.xlu1 %v442_v33 }
  0xce   : > { %451 = vadd.xlane.f32.xlu1 %v444_v34 }
 0x147   : > { %v404_v36 = vpop.xlane.xlu1 %403 }
 0x148   : > { %781 = vlog2.f32 %v404_v36  ;;  %v500_v36 = vld [vmem:[%s1015_s16] sm:$0x1] }
 0x14b   : > { %v408_v37 = vpop.xlane.xlu1 %407  ;;  %v406_v38 = vpop.xlane.xlu0 %405 }
 0x14c   : > { %783 = vlog2.f32 %v408_v37  ;;  %v504_v37 = vld [vmem:[%s1020_s17] sm:$0x1] }
 0x14d   : > { %785 = vlog2.f32 %v406_v38 }
 0x14f   : > { %v410_v39 = vpop.xlane.xlu1 %409  ;;  %v450_v55 = vpop.xlane.xlu0 %449 }
 0x150   : > { %787 = vlog2.f32 %v410_v39 }
 0x152   : > { %v782_v40 = vpop.eup %781 }
 0x153   : > { %v412_v41 = vmul.f32 0.6931472, %v782_v40  ;;  %v446_v42 = vpop.xlane.xlu1 %445 }
 0x155   : > { %v419_v43 = vadd.f32 %v412_v41, %v384_v9 }
 0x156   : > { %v784_v44 = vpop.eup %783 }
 0x157   : > { %v786_v45 = vpop.eup %785  ;;  %v416_v46 = vmul.f32 0.6931472, %v784_v44  ;;  %v453_v48 = vsub.f32 %v419_v43, %v446_v42  ;;  %v448_v49 = vpop.xlane.xlu1 %447 }
 0x158   : > { %v414_v47 = vmul.f32 0.6931472, %v786_v45 }
 0x159   : > { %v421_v52 = vadd.f32 %v416_v46, %v1002_v10  ;;  %v461_v62 = vmul.f32 %v457_v50, %v453_v48  ;;  %v483_v63 = vmul.f32 %v479_v51, %v453_v48 }
 0x15a   : > { %v788_v53 = vpop.eup %787  ;;  %v420_v56 = vadd.f32 %v414_v47, %v1005_v15 }
 0x15b   : > { %v418_v57 = vmul.f32 0.6931472, %v788_v53  ;;  %v455_v59 = vsub.f32 %v421_v52, %v450_v55  ;;  %v452_v8 = vpop.xlane.xlu1 %451  ;;  %v466_v10 = vsel %vm465_vm5, %v461_v62, 0.0  ;;  %v487_v11 = vsel %vm465_vm5, %v483_v63, 0.0 }
 0x15c   : > { %v454_v0 = vsub.f32 %v420_v56, %v448_v49 }
 0x15d   : > { %v422_v1 = vadd.f32 %v418_v57, %v1007_v16  ;;  %v463_v2 = vmul.f32 %v459_v54, %v455_v59  ;;  %v485_v3 = vmul.f32 %v481_v58, %v455_v59 }
 0x15e   : > { %v462_v4 = vmul.f32 %v458_v60, %v454_v0  ;;  %v484_v5 = vmul.f32 %v480_v61, %v454_v0 }
 0x15f   : > { %v456_v9 = vsub.f32 %v422_v1, %v452_v8  ;;  %v469_v18 = vsel %vm465_vm5, %v463_v2, 0.0  ;;  %v490_v19 = vsel %vm465_vm5, %v485_v3, 0.0 }
 0x160   : > { %v467_v12 = vsel %vm465_vm5, %v462_v4, 0.0  ;;  %v488_v13 = vsel %vm465_vm5, %v484_v5, 0.0 }
 0x161   : > { %v468_v14 = vadd.f32 %v467_v12, %v466_v10  ;;  %v489_v15 = vadd.f32 %v488_v13, %v487_v11  ;;  %v464_v17 = vmul.f32 %v460_v6, %v456_v9  ;;  %v486_v16 = vmul.f32 %v482_v7, %v456_v9 }
 0x163   : > { %v470_v20 = vadd.f32 %v469_v18, %v468_v14  ;;  %v471_v21 = vsel %vm465_vm5, %v464_v17, 0.0  ;;  %v491_v22 = vadd.f32 %v490_v19, %v489_v15  ;;  %v492_v23 = vsel %vm465_vm5, %v486_v16, 0.0 }
 0x165   : > { %v472_v24 = vadd.f32 %v471_v21, %v470_v20  ;;  %v493_v25 = vadd.f32 %v492_v23, %v491_v22 }
 0x167   : > { %v473_v26 = vrot.slane %v472_v24, 4  ;;  %v494_v27 = vrot.slane %v493_v25, 4 }
 0x169   : > { %v474_v28 = vadd.f32 %v473_v26, %v472_v24  ;;  %v495_v29 = vadd.f32 %v494_v27, %v493_v25 }
 0x16b   : > { %v475_v30 = vrot.slane %v474_v28, 2  ;;  %v496_v31 = vrot.slane %v495_v29, 2 }
 0x16d   : > { %v476_v32 = vadd.f32 %v475_v30, %v474_v28  ;;  %v497_v33 = vadd.f32 %v496_v31, %v495_v29 }
 0x16f   : > { %v477_v34 = vrot.slane %v476_v32, 1  ;;  %v498_v35 = vrot.slane %v497_v33, 1 }
 0x171   : > { %v478_v38 = vadd.f32 %v477_v34, %v476_v32  ;;  %v499_v39 = vadd.f32 %v498_v35, %v497_v33 }
 0x173   : > { %v501_v40 = vadd.f32 %v500_v36, %v478_v38  ;;  %v505_v41 = vadd.f32 %v504_v37, %v499_v39 }
 0x175   : > { %503 = vst.msk [vmem:[%s1015_s16] sm:$0x1] %vm372_vm4, %v501_v40  ;;  %506 = vst.msk [vmem:[%s1020_s17] sm:$0x1] %vm372_vm4, %v505_v41 }
 0x176   : > { %802 = shalt.err (!%p799_p5)
}
 0x177   : > { %s803_s16 = scalar_lea.hbm %s1051_s14, 16  ;;  %s807_s13 = scalar_lea.hbm %s1136_s4, 32 }
 0x178   : > { %p804_p6 = scmp.ne.s32.totalorder %s1051_s14, %s803_s16  ;;  %p808_p10 = scmp.lt.u32.totalorder %s1051_s14, %s1136_s4 }
 0x179   : > { %p809_p11 = scmp.lt.u32.totalorder %s807_s13, %s803_s16  ;;  %p811_p13 = scmp.lt.u32.totalorder %s803_s16, %s1051_s14 }
 0x17a   : > { %p805_p7 = pnand %p804_p6, %p975_p4 }
 0x17b   : > { %p810_p12 = por %p809_p11, %p808_p10 }
 0x17c   : > { %p806_p9 = pneg %p805_p7 }
 0x17d   : > { %p812_p0 = por %p811_p13, %p810_p12 }
 0x17f   : > { %p813_p1 = pnand %p812_p0, %p806_p9 }
 0x181   : > { %816 = shalt.err (!%p813_p1)
}
 0x182   : > { %709 = dma.vmem_to_hbm [thread:$0]  (%p975_p4), %s1053_s10, 16, %s1051_s14, %s508_s27  }
 0x183   : > { %s512_s29 = scalar_lea.sflag [#allocation5], %s1012_s15  ;;  %s817_s7 = scalar_lea.vmem %s1060_s11, 16 }
 0x184   : > { %p818_p2 = scmp.ne.s32.totalorder %s1060_s11, %s817_s7  ;;  %s904_s9 = smov [#allocation4]  }
 0x185   : > { %s821_s12 = sshll.u32 %s904_s9, 4  ;;  %s822_s12 = int_to_ptr.vmem [resolvable:$false] %s821_s12 }
 0x186   : > { %p819_p3 = pnand %p818_p2, %p975_p4  ;;  %s823_s16 = scalar_lea.vmem %s822_s12, 32 }
 0x187   : > { %p824_p6 = scmp.lt.s32.totalorder %s1060_s11, %s822_s12  ;;  %p825_p7 = scmp.lt.s32.totalorder %s823_s16, %s817_s7 }
 0x188   : > { %p820_p5 = pneg %p819_p3 }
 0x189   : > { %p826_p9 = por %p825_p7, %p824_p6 }
 0x18b   : > { %p827_p10 = pnand %p826_p9, %p820_p5 }
 0x18d   : > { %830 = shalt.err (!%p827_p10)
}
 0x18e   : > { %s831_s15 = scalar_lea.hbm %s1058_s25, 16  ;;  %s835_s27 = scalar_lea.hbm %s1137_s5, 32 }
 0x18f   : > { %p832_p11 = scmp.ne.s32.totalorder %s1058_s25, %s831_s15  ;;  %p836_p0 = scmp.lt.u32.totalorder %s1058_s25, %s1137_s5 }
 0x190   : > { %p837_p1 = scmp.lt.u32.totalorder %s835_s27, %s831_s15  ;;  %p839_p3 = scmp.lt.u32.totalorder %s831_s15, %s1058_s25 }
 0x191   : > { %p833_p12 = pnand %p832_p11, %p975_p4 }
 0x192   : > { %p838_p2 = por %p837_p1, %p836_p0 }
 0x193   : > { %p834_p13 = pneg %p833_p12 }
 0x194   : > { %p840_p5 = por %p839_p3, %p838_p2 }
 0x196   : > { %p841_p6 = pnand %p840_p5, %p834_p13 }
 0x198   : > { %844 = shalt.err (!%p841_p6)
}
 0x199   : > { %710 = dma.vmem_to_hbm [thread:$0]  (%p975_p4), %s1060_s11, 16, %s1058_s25, %s512_s29  }
 0x19a PF: > { %p720_p7 = scmp.ge.s32.totalorder %s899_s23, 2  ;;  %s549_s13 = sand.u32 1, %s879_s18  }
 0x19b   : > { %s550_s21 = scalar_lea.sflag [#allocation3], %s549_s13 }
 0x19c   : > { %p714_p9 = pnand %p720_p7, %p982_p8 }
 0x19e   : > { %870 = dma.done.wait (!%p714_p9), %s550_s21, 16  }
 0x19f   : > { %872 = vsyncadd (!%p714_p9), %s550_s21, 4294967280  ;;  %s558_s24 = scalar_lea.sflag [#allocation5], %s549_s13 }
 0x1a0   : > { %874 = dma.done.wait (!%p714_p9), %s558_s24, 16  }
 0x1a1   : > { %876 = vsyncadd (!%p714_p9), %s558_s24, 4294967280  ;;  %s22_s23 = sadd.s32 1, %s899_s23   ;;  %s1140_s18 = smov %s883_s19 }
 0x1a2   : > { %p19_p10 = scmp.ge.s32.totalorder %s22_s23, 4   ;;  %s1141_s19 = smov %s887_s20 }
 0x1a3   : > { %s1142_s20 = smov %s988_s6  ;;  %s1143_s21 = smov %s895_s22 }
 0x1a4   : > { %s1144_s22 = smov %s1146_s26  ;;  %21 = sbr.rel (!%p19_p10) target bundleno = 6 (0x6), region = 101 }
 0x1ab   :  { %562 = vsyncpa [#allocation3], 1 }
 0x1ac   :  { %564 = vsyncpa [#allocation3 + $0x1], 1 }
 0x1ad   :  { %565 = vsyncpa [#allocation5], 1 }
 0x1ae   :  { %567 = vsyncpa [#allocation5 + $0x1], 1 }

</bundles_post_ra>
